<compile_context>
chip_gen: v7x
topology: tpu7x:2x2x1
jax: 0.10.0
libtpu: 0.0.40
codegen_flags: <defaults>
</compile_context>

<pallas_src>
from dataclasses import dataclass
from typing import Optional

import jax
import jax.numpy as jnp
from jax.experimental import pallas as pl
from jax.experimental.pallas import tpu as pltpu

EPS = 1e-5  # F.layer_norm default


@dataclass
class FeatureSpec:
    type: str                      # 'categorical' | 'numerical'
    embed_size: int
    vocab_size: Optional[int] = None
    padding_idx: Optional[int] = None
    sequence_len: Optional[int] = None


def _round_up(x, m):
    return ((x + m - 1) // m) * m


# ---------------------------------------------------------------------------
# static metadata
# ---------------------------------------------------------------------------
def _build_meta(feature_specs):
    """Per-feature static metadata: output offsets and 128-aligned K segments."""
    meta = []
    e_off = k_off = cat_off = num_off = 0
    for name, spec in feature_specs.items():
        if spec.type == "categorical":
            rows = spec.vocab_size + int(spec.padding_idx is not None)  # table rows
            seq = spec.sequence_len or 1
            mean_over_seq = spec.sequence_len is not None
        else:  # numerical
            rows = spec.sequence_len or 1                               # Linear in-features
            seq = rows
            mean_over_seq = False
        k_width = _round_up(rows, 128)                                  # lane-aligned K segment
        m = dict(name=name, type=spec.type, embed_size=spec.embed_size,
                 rows=rows, seq=seq, mean_over_seq=mean_over_seq,
                 e_off=e_off, k_off=k_off, k_width=k_width)
        if spec.type == "categorical":
            m["in_off"], cat_off = cat_off, cat_off + seq
        else:
            m["in_off"], num_off = num_off, num_off + seq
        meta.append(m)
        e_off += spec.embed_size
        k_off += k_width
    return meta, e_off, k_off, cat_off, num_off


def _pack_params(params, meta, e_pad, k_pad, weight_dtype):
    """Fused block-diagonal weight W (k_pad, e_pad), bias row, LN mean projector."""
    w = jnp.zeros((k_pad, e_pad), jnp.float32)
    bias = jnp.zeros((1, e_pad), jnp.float32)
    proj = jnp.zeros((e_pad, e_pad), jnp.float32)
    for m in meta:
        name, eo, e, ko = m["name"], m["e_off"], m["embed_size"], m["k_off"]
        if m["type"] == "categorical":
            tab = params[name][0].astype(jnp.float32)
            if m["mean_over_seq"]:
                tab = tab / float(m["seq"])          # fold the 1/L sequence mean into W
            w = w.at[ko:ko + m["rows"], eo:eo + e].set(tab)
        else:
            lin_w, lin_b = params[name]
            w = w.at[ko:ko + m["rows"], eo:eo + e].set(lin_w.astype(jnp.float32))
            bias = bias.at[0, eo:eo + e].set(lin_b.reshape(-1).astype(jnp.float32))
        # block-diagonal per-feature mean projector: P = S @ Bcast precomputed
        proj = proj.at[eo:eo + e, eo:eo + e].set(jnp.full((e, e), 1.0 / e, jnp.float32))
    # TODO(synk): for vocab_size beyond a few thousand, route that feature via a
    # DMA-gather path (PrefetchScalarGridSpec + pl.Element row gather) instead of
    # growing W's K dimension / the one-hot counts (O(B*V*E) work, VMEM blowup).
    return w.astype(weight_dtype), bias, proj


def _pick_tile_b(batch, tile_b):
    cap = max(1, min(tile_b, batch))
    if batch >= 16:
        cap = min(cap, batch // 2)           # grid >= 2: keep both v7x TCs busy
    for t in range(cap, 0, -1):
        if batch % t == 0 and (t % 8 == 0 or t == batch):
            return t
    return batch


# ---------------------------------------------------------------------------
# kernel
# ---------------------------------------------------------------------------
def _make_kernel(meta, compute_dtype):
    meta_cat = [m for m in meta if m["type"] == "categorical"]
    meta_num = [m for m in meta if m["type"] == "numerical"]
    has_cat, has_num = bool(meta_cat), bool(meta_num)

    def kernel(*refs):
        it = iter(refs)
        cat_ref = next(it) if has_cat else None
        num_ref = next(it) if has_num else None
        w_ref, b_ref, p_ref = next(it), next(it), next(it)
        emb_ref, ln_ref = next(it), next(it)
        act_ref = next(it)                                   # (TB, K_pad) scratch slab

        tb = act_ref.shape[0]

        # ---- build fused activation slab; every store is 128-lane aligned ----
        if has_cat:
            cat = cat_ref[...]                               # (TB, L_cat) int32
            for m in meta_cat:
                vw = m["k_width"]
                iota = jax.lax.broadcasted_iota(jnp.int32, (tb, vw), 1)
                counts = jnp.zeros((tb, vw), jnp.float32)
                for l in range(m["seq"]):                    # short static unroll over L
                    idx = cat[:, m["in_off"] + l: m["in_off"] + l + 1]
                    counts = counts + (idx == iota).astype(jnp.float32)
                act_ref[:, m["k_off"]:m["k_off"] + vw] = counts.astype(compute_dtype)
        if has_num:
            num = num_ref[...].astype(jnp.float32)           # (TB, L_num)
            for m in meta_num:
                x = num[:, m["in_off"]:m["in_off"] + m["seq"]]
                pad = m["k_width"] - m["seq"]
                if pad:
                    x = jnp.concatenate([x, jnp.zeros((tb, pad), jnp.float32)], axis=-1)
                act_ref[:, m["k_off"]:m["k_off"] + m["k_width"]] = x.astype(compute_dtype)

        # ---- one block-diagonal matmul -> lane-dense (TB, E_pad) slab --------
        emb = jnp.dot(act_ref[...], w_ref[...], preferred_element_type=jnp.float32)
        emb = emb + b_ref[...]                               # Linear biases: one VPU add
        emb_ref[...] = emb                                   # single full-width store

        # ---- per-feature LayerNorm via one (E_pad,E_pad) mean projector ------
        p = p_ref[...]
        mu = jnp.dot(emb, p, preferred_element_type=jnp.float32)
        d = emb - mu
        var = jnp.dot(d * d, p, preferred_element_type=jnp.float32)
        ln_ref[...] = d * jax.lax.rsqrt(var + EPS)           # single full-width store

    return kernel


# ---------------------------------------------------------------------------
# wrapper
# ---------------------------------------------------------------------------
def feature_embedding_forward(inputs, params, feature_specs, *,
                              tile_b=256, weight_dtype=jnp.bfloat16,
                              single_buffer_params=False):
    """inputs: dict name -> array (categorical int32 [B,L], numerical f32 [B,L]).
    params: dict name -> (embedding_table,) or (linear_w (in,out), linear_b (out,)).
    returns (emb, emb_ln), both f32 [B, sum(embed_size)]."""
    meta, embed_dim, k_pad, l_cat, l_num = _build_meta(feature_specs)
    e_pad = _round_up(embed_dim, 128)
    meta_cat = [m for m in meta if m["type"] == "categorical"]
    meta_num = [m for m in meta if m["type"] == "numerical"]

    batch = next(iter(inputs.values())).shape[0]
    tile_b = _pick_tile_b(batch, tile_b)
    grid = (batch // tile_b,)

    w_fused, bias_row, proj = _pack_params(params, meta, e_pad, k_pad, weight_dtype)

    call_inputs, in_specs = [], []
    if meta_cat:   # pack all categorical inputs -> one (B, L_cat) int32 DMA per step
        cat_packed = jnp.concatenate(
            [inputs[m["name"]].astype(jnp.int32) for m in meta_cat], axis=1)
        call_inputs.append(cat_packed)
        in_specs.append(pl.BlockSpec((tile_b, l_cat), lambda i: (i, 0)))
    if meta_num:   # pack all numerical inputs -> one (B, L_num) f32 DMA per step
        num_packed = jnp.concatenate(
            [inputs[m["name"]].astype(jnp.float32) for m in meta_num], axis=1)
        call_inputs.append(num_packed)
        in_specs.append(pl.BlockSpec((tile_b, l_num), lambda i: (i, 0)))

    def _const_spec(shape):
        # Grid-invariant parameters; on v7x (64 MiB VMEM) single-buffer them so the
        # fused weight is not held twice by the default double-buffering.
        if single_buffer_params:
            return pl.BlockSpec(shape, lambda i: (0, 0), pipeline_mode=pl.Buffered(1))
        return pl.BlockSpec(shape, lambda i: (0, 0))

    for p_arr in (w_fused, bias_row, proj):
        call_inputs.append(p_arr)
        in_specs.append(_const_spec(p_arr.shape))

    out_spec = pl.BlockSpec((tile_b, e_pad), lambda i: (i, 0))
    out_shape = (jax.ShapeDtypeStruct((batch, e_pad), jnp.float32),
                 jax.ShapeDtypeStruct((batch, e_pad), jnp.float32))

    emb, ln = pl.pallas_call(
        _make_kernel(meta, weight_dtype),
        out_shape=out_shape,
        grid=grid,
        in_specs=in_specs,
        out_specs=(out_spec, out_spec),
        scratch_shapes=[pltpu.VMEM((tile_b, k_pad), weight_dtype)],
        compiler_params=pltpu.CompilerParams(
            dimension_semantics=("parallel",)),      # megacore / dual-TC sharding
    )(*call_inputs)

    if e_pad != embed_dim:                           # drop the lane padding
        emb, ln = emb[:, :embed_dim], ln[:, :embed_dim]
    return emb, ln


# ---------------------------------------------------------------------------
# pure-JAX reference (mirrors the PyTorch forward exactly)
# ---------------------------------------------------------------------------
def reference_forward(inputs, params, feature_specs):
    meta, *_ = _build_meta(feature_specs)
    v_embed, v_ln = [], []
    for m in meta:
        name = m["name"]
        if m["type"] == "categorical":
            tab = params[name][0]
            emb = tab[inputs[name]]                      # (B, L, E)
            emb = jnp.mean(emb, axis=1) if m["mean_over_seq"] else emb[:, 0, :]
        else:
            w, b = params[name]
            emb = inputs[name] @ w + b
        v_embed.append(emb)
        mu = jnp.mean(emb, axis=-1, keepdims=True)
        var = jnp.mean((emb - mu) ** 2, axis=-1, keepdims=True)
        v_ln.append((emb - mu) / jnp.sqrt(var + EPS))
    return jnp.concatenate(v_embed, -1), jnp.concatenate(v_ln, -1)


if __name__ == "__main__":
    B = 64
    feature_specs = {
        "item_hist": FeatureSpec("categorical", embed_size=32, vocab_size=50,
                                 padding_idx=0, sequence_len=8),
        "user_id":   FeatureSpec("categorical", embed_size=32, vocab_size=40),
        "price_seq": FeatureSpec("numerical",   embed_size=16, sequence_len=16),
    }

    key = jax.random.PRNGKey(0)
    k = jax.random.split(key, 8)

    # ---- deterministic parameter init (mirrors module __init__ shapes) ----
    params = {}
    tab_item = 0.02 * jax.random.normal(k[0], (50 + 1, 32), jnp.float32)
    tab_item = tab_item.at[0].set(0.0)               # padding_idx row zeroed
    params["item_hist"] = (tab_item,)
    params["user_id"] = (0.02 * jax.random.normal(k[1], (40, 32), jnp.float32),)
    params["price_seq"] = (
        0.1 * jax.random.normal(k[2], (16, 16), jnp.float32),   # (in, out)
        0.1 * jax.random.normal(k[3], (16,), jnp.float32),
    )

    # ---- deterministic example inputs ----
    inputs = {
        "item_hist": jax.random.randint(k[4], (B, 8), 0, 51, jnp.int32),
        "user_id":   jax.random.randint(k[5], (B, 1), 0, 40, jnp.int32),
        "price_seq": jax.random.normal(k[6], (B, 16), jnp.float32),
    }

    emb_ref, ln_ref = reference_forward(inputs, params, feature_specs)

    # f32 weights: exactly matches the PyTorch math (tight tolerances).
    emb, ln = feature_embedding_forward(inputs, params, feature_specs,
                                        weight_dtype=jnp.float32)
    emb, ln = jax.block_until_ready((emb, ln))
    assert emb.shape == (B, 80) and ln.shape == (B, 80)
    assert jnp.allclose(emb, emb_ref, atol=1e-5, rtol=1e-5)
    assert jnp.allclose(ln, ln_ref, atol=1e-4, rtol=1e-4)

    # bf16 weights/activation (perf default): f32 MXU accumulation keeps the
    # categorical counts exact; the numerical Linear loses a little precision.
    emb16, ln16 = feature_embedding_forward(inputs, params, feature_specs,
                                            weight_dtype=jnp.bfloat16)
    emb16, ln16 = jax.block_until_ready((emb16, ln16))
    assert jnp.allclose(emb16, emb_ref, atol=5e-2, rtol=5e-2)
    assert jnp.allclose(ln16, ln_ref, atol=5e-2, rtol=5e-2)

    print("KERNEL_OK")
</pallas_src>

<mosaic_0001>
module attributes {stable_mosaic.version = 11 : i64} {
  func.func @kernel(%arg0: i32, %arg1: memref<32x9xi32, #tpu.memory_space<vmem>>, %arg2: memref<32x16xf32, #tpu.memory_space<vmem>>, %arg3: memref<384x128xf32, #tpu.memory_space<vmem>>, %arg4: memref<1x128xf32, #tpu.memory_space<vmem>>, %arg5: memref<128x128xf32, #tpu.memory_space<vmem>>, %arg6: memref<32x128xf32, #tpu.memory_space<vmem>>, %arg7: memref<32x128xf32, #tpu.memory_space<vmem>>, %arg8: memref<32x384xf32, #tpu.memory_space<vmem>>) attributes {dimension_semantics = [#tpu.dimension_semantics<parallel>], iteration_bounds = array<i64: 2>, scalar_prefetch = 0 : i64, scratch_operands = 1 : i64, tpu.core_type = #tpu.core_type<tc>, window_params = [{transform_indices = @transform_0, window_bounds = array<i64: 32, 9>}, {transform_indices = @transform_1, window_bounds = array<i64: 32, 16>}, {pipeline_mode = #tpu.pipeline_mode<synchronous>, transform_indices = @transform_2, window_bounds = array<i64: 384, 128>}, {pipeline_mode = #tpu.pipeline_mode<synchronous>, transform_indices = @transform_3, window_bounds = array<i64: 1, 128>}, {pipeline_mode = #tpu.pipeline_mode<synchronous>, transform_indices = @transform_4, window_bounds = array<i64: 128, 128>}, {transform_indices = @transform_5, window_bounds = array<i64: 32, 128>}, {transform_indices = @transform_6, window_bounds = array<i64: 32, 128>}]} {
    %c0 = arith.constant 0 : index
    %c0_0 = arith.constant 0 : index
    %0 = vector.load %arg1[%c0, %c0_0] : memref<32x9xi32, #tpu.memory_space<vmem>>, vector<32x9xi32>
    %1 = tpu.iota {dimensions = array<i32: 1>} : vector<32x128xi32>
    %cst = arith.constant 0.000000e+00 : f32
    %2 = vector.broadcast %cst : f32 to vector<32x128xf32>
    %3 = vector.extract_strided_slice %0 {offsets = [0, 0], sizes = [32, 1], strides = [1, 1]} : vector<32x9xi32> to vector<32x1xi32>
    %4 = vector.broadcast %3 : vector<32x1xi32> to vector<32x128xi32>
    %5 = arith.cmpi eq, %4, %1 : vector<32x128xi32>
    %6 = arith.extui %5 : vector<32x128xi1> to vector<32x128xi32>
    %7 = arith.sitofp %6 : vector<32x128xi32> to vector<32x128xf32>
    %8 = arith.addf %2, %7 : vector<32x128xf32>
    %9 = vector.extract_strided_slice %0 {offsets = [0, 1], sizes = [32, 1], strides = [1, 1]} : vector<32x9xi32> to vector<32x1xi32>
    %10 = vector.broadcast %9 : vector<32x1xi32> to vector<32x128xi32>
    %11 = arith.cmpi eq, %10, %1 : vector<32x128xi32>
    %12 = arith.extui %11 : vector<32x128xi1> to vector<32x128xi32>
    %13 = arith.sitofp %12 : vector<32x128xi32> to vector<32x128xf32>
    %14 = arith.addf %8, %13 : vector<32x128xf32>
    %15 = vector.extract_strided_slice %0 {offsets = [0, 2], sizes = [32, 1], strides = [1, 1]} : vector<32x9xi32> to vector<32x1xi32>
    %16 = vector.broadcast %15 : vector<32x1xi32> to vector<32x128xi32>
    %17 = arith.cmpi eq, %16, %1 : vector<32x128xi32>
    %18 = arith.extui %17 : vector<32x128xi1> to vector<32x128xi32>
    %19 = arith.sitofp %18 : vector<32x128xi32> to vector<32x128xf32>
    %20 = arith.addf %14, %19 : vector<32x128xf32>
    %21 = vector.extract_strided_slice %0 {offsets = [0, 3], sizes = [32, 1], strides = [1, 1]} : vector<32x9xi32> to vector<32x1xi32>
    %22 = vector.broadcast %21 : vector<32x1xi32> to vector<32x128xi32>
    %23 = arith.cmpi eq, %22, %1 : vector<32x128xi32>
    %24 = arith.extui %23 : vector<32x128xi1> to vector<32x128xi32>
    %25 = arith.sitofp %24 : vector<32x128xi32> to vector<32x128xf32>
    %26 = arith.addf %20, %25 : vector<32x128xf32>
    %27 = vector.extract_strided_slice %0 {offsets = [0, 4], sizes = [32, 1], strides = [1, 1]} : vector<32x9xi32> to vector<32x1xi32>
    %28 = vector.broadcast %27 : vector<32x1xi32> to vector<32x128xi32>
    %29 = arith.cmpi eq, %28, %1 : vector<32x128xi32>
    %30 = arith.extui %29 : vector<32x128xi1> to vector<32x128xi32>
    %31 = arith.sitofp %30 : vector<32x128xi32> to vector<32x128xf32>
    %32 = arith.addf %26, %31 : vector<32x128xf32>
    %33 = vector.extract_strided_slice %0 {offsets = [0, 5], sizes = [32, 1], strides = [1, 1]} : vector<32x9xi32> to vector<32x1xi32>
    %34 = vector.broadcast %33 : vector<32x1xi32> to vector<32x128xi32>
    %35 = arith.cmpi eq, %34, %1 : vector<32x128xi32>
    %36 = arith.extui %35 : vector<32x128xi1> to vector<32x128xi32>
    %37 = arith.sitofp %36 : vector<32x128xi32> to vector<32x128xf32>
    %38 = arith.addf %32, %37 : vector<32x128xf32>
    %39 = vector.extract_strided_slice %0 {offsets = [0, 6], sizes = [32, 1], strides = [1, 1]} : vector<32x9xi32> to vector<32x1xi32>
    %40 = vector.broadcast %39 : vector<32x1xi32> to vector<32x128xi32>
    %41 = arith.cmpi eq, %40, %1 : vector<32x128xi32>
    %42 = arith.extui %41 : vector<32x128xi1> to vector<32x128xi32>
    %43 = arith.sitofp %42 : vector<32x128xi32> to vector<32x128xf32>
    %44 = arith.addf %38, %43 : vector<32x128xf32>
    %45 = vector.extract_strided_slice %0 {offsets = [0, 7], sizes = [32, 1], strides = [1, 1]} : vector<32x9xi32> to vector<32x1xi32>
    %46 = vector.broadcast %45 : vector<32x1xi32> to vector<32x128xi32>
    %47 = arith.cmpi eq, %46, %1 : vector<32x128xi32>
    %48 = arith.extui %47 : vector<32x128xi1> to vector<32x128xi32>
    %49 = arith.sitofp %48 : vector<32x128xi32> to vector<32x128xf32>
    %50 = arith.addf %44, %49 : vector<32x128xf32>
    %c0_1 = arith.constant 0 : index
    %c0_2 = arith.constant 0 : index
    %51 = vector.load %arg8[%c0_1, %c0_2] : memref<32x384xf32, #tpu.memory_space<vmem>>, vector<32x128xf32>
    tpu.vector_store %arg8[%c0_1, %c0_2], %50 {strides = array<i32>} : memref<32x384xf32, #tpu.memory_space<vmem>>, vector<32x128xf32>,
    %52 = tpu.iota {dimensions = array<i32: 1>} : vector<32x128xi32>
    %cst_3 = arith.constant 0.000000e+00 : f32
    %53 = vector.broadcast %cst_3 : f32 to vector<32x128xf32>
    %54 = vector.extract_strided_slice %0 {offsets = [0, 8], sizes = [32, 1], strides = [1, 1]} : vector<32x9xi32> to vector<32x1xi32>
    %55 = vector.broadcast %54 : vector<32x1xi32> to vector<32x128xi32>
    %56 = arith.cmpi eq, %55, %52 : vector<32x128xi32>
    %57 = arith.extui %56 : vector<32x128xi1> to vector<32x128xi32>
    %58 = arith.sitofp %57 : vector<32x128xi32> to vector<32x128xf32>
    %59 = arith.addf %53, %58 : vector<32x128xf32>
    %c0_4 = arith.constant 0 : index
    %c128 = arith.constant 128 : index
    %60 = vector.load %arg8[%c0_4, %c128] : memref<32x384xf32, #tpu.memory_space<vmem>>, vector<32x128xf32>
    tpu.vector_store %arg8[%c0_4, %c128], %59 {strides = array<i32>} : memref<32x384xf32, #tpu.memory_space<vmem>>, vector<32x128xf32>,
    %c0_5 = arith.constant 0 : index
    %c0_6 = arith.constant 0 : index
    %61 = vector.load %arg2[%c0_5, %c0_6] : memref<32x16xf32, #tpu.memory_space<vmem>>, vector<32x16xf32>
    %cst_7 = arith.constant 0.000000e+00 : f32
    %62 = vector.broadcast %cst_7 : f32 to vector<32x112xf32>
    %63 = tpu.concatenate %61, %62 in 1 : vector<32x16xf32>, vector<32x112xf32> -> vector<32x128xf32>
    %c0_8 = arith.constant 0 : index
    %c256 = arith.constant 256 : index
    %64 = vector.load %arg8[%c0_8, %c256] : memref<32x384xf32, #tpu.memory_space<vmem>>, vector<32x128xf32>
    tpu.vector_store %arg8[%c0_8, %c256], %63 {strides = array<i32>} : memref<32x384xf32, #tpu.memory_space<vmem>>, vector<32x128xf32>,
    %c0_9 = arith.constant 0 : index
    %c0_10 = arith.constant 0 : index
    %65 = vector.load %arg8[%c0_9, %c0_10] : memref<32x384xf32, #tpu.memory_space<vmem>>, vector<32x384xf32>
    %c0_11 = arith.constant 0 : index
    %c0_12 = arith.constant 0 : index
    %66 = vector.load %arg3[%c0_11, %c0_12] : memref<384x128xf32, #tpu.memory_space<vmem>>, vector<384x128xf32>
    %cst_13 = arith.constant dense<0.000000e+00> : vector<32x128xf32>
    %67 = tpu.matmul %65, %66, %cst_13 {dimension_numbers = #tpu.dot_dimension_numbers<[1], [0], [0], [1], [0, 0, 1, 1], [], []>} : vector<32x384xf32>, vector<384x128xf32>, vector<32x128xf32> -> vector<32x128xf32>
    %c0_14 = arith.constant 0 : index
    %c0_15 = arith.constant 0 : index
    %68 = vector.load %arg4[%c0_14, %c0_15] : memref<1x128xf32, #tpu.memory_space<vmem>>, vector<1x128xf32>
    %69 = vector.broadcast %68 : vector<1x128xf32> to vector<32x128xf32>
    %70 = arith.addf %67, %69 : vector<32x128xf32>
    %c0_16 = arith.constant 0 : index
    %c0_17 = arith.constant 0 : index
    %71 = vector.load %arg6[%c0_16, %c0_17] : memref<32x128xf32, #tpu.memory_space<vmem>>, vector<32x128xf32>
    tpu.vector_store %arg6[%c0_16, %c0_17], %70 {strides = array<i32>} : memref<32x128xf32, #tpu.memory_space<vmem>>, vector<32x128xf32>,
    %c0_18 = arith.constant 0 : index
    %c0_19 = arith.constant 0 : index
    %72 = vector.load %arg5[%c0_18, %c0_19] : memref<128x128xf32, #tpu.memory_space<vmem>>, vector<128x128xf32>
    %cst_20 = arith.constant dense<0.000000e+00> : vector<32x128xf32>
    %73 = tpu.matmul %70, %72, %cst_20 {dimension_numbers = #tpu.dot_dimension_numbers<[1], [0], [0], [1], [0, 0, 1, 1], [], []>} : vector<32x128xf32>, vector<128x128xf32>, vector<32x128xf32> -> vector<32x128xf32>
    %74 = arith.subf %70, %73 : vector<32x128xf32>
    %75 = arith.mulf %74, %74 : vector<32x128xf32>
    %cst_21 = arith.constant dense<0.000000e+00> : vector<32x128xf32>
    %76 = tpu.matmul %75, %72, %cst_21 {dimension_numbers = #tpu.dot_dimension_numbers<[1], [0], [0], [1], [0, 0, 1, 1], [], []>} : vector<32x128xf32>, vector<128x128xf32>, vector<32x128xf32> -> vector<32x128xf32>
    %cst_22 = arith.constant 9.99999974E-6 : f32
    %77 = vector.broadcast %cst_22 : f32 to vector<32x128xf32>
    %78 = arith.addf %76, %77 : vector<32x128xf32>
    %79 = math.rsqrt %78 : vector<32x128xf32>
    %80 = arith.mulf %74, %79 : vector<32x128xf32>
    %c0_23 = arith.constant 0 : index
    %c0_24 = arith.constant 0 : index
    %81 = vector.load %arg7[%c0_23, %c0_24] : memref<32x128xf32, #tpu.memory_space<vmem>>, vector<32x128xf32>
    tpu.vector_store %arg7[%c0_23, %c0_24], %80 {strides = array<i32>} : memref<32x128xf32, #tpu.memory_space<vmem>>, vector<32x128xf32>,
    return
  }
  func.func @transform_0(%arg0: i32) -> (i32, i32) {
    %c0_i32 = arith.constant 0 : i32
    %c0_i32_0 = arith.constant 0 : i32
    return %arg0, %c0_i32 : i32, i32
  }
  func.func @transform_1(%arg0: i32) -> (i32, i32) {
    %c0_i32 = arith.constant 0 : i32
    %c0_i32_0 = arith.constant 0 : i32
    return %arg0, %c0_i32 : i32, i32
  }
  func.func @transform_2(%arg0: i32) -> (i32, i32) {
    %c0_i32 = arith.constant 0 : i32
    %c0_i32_0 = arith.constant 0 : i32
    %c0_i32_1 = arith.constant 0 : i32
    return %c0_i32, %c0_i32_0 : i32, i32
  }
  func.func @transform_3(%arg0: i32) -> (i32, i32) {
    %c0_i32 = arith.constant 0 : i32
    %c0_i32_0 = arith.constant 0 : i32
    %c0_i32_1 = arith.constant 0 : i32
    return %c0_i32, %c0_i32_0 : i32, i32
  }
  func.func @transform_4(%arg0: i32) -> (i32, i32) {
    %c0_i32 = arith.constant 0 : i32
    %c0_i32_0 = arith.constant 0 : i32
    %c0_i32_1 = arith.constant 0 : i32
    return %c0_i32, %c0_i32_0 : i32, i32
  }
  func.func @transform_5(%arg0: i32) -> (i32, i32) {
    %c0_i32 = arith.constant 0 : i32
    %c0_i32_0 = arith.constant 0 : i32
    return %arg0, %c0_i32 : i32, i32
  }
  func.func @transform_6(%arg0: i32) -> (i32, i32) {
    %c0_i32 = arith.constant 0 : i32
    %c0_i32_0 = arith.constant 0 : i32
    return %arg0, %c0_i32 : i32, i32
  }
}

</mosaic_0001>

<bundles_post_ra>
// kernel: tpu_custom_call.1
= control target key start
LH: loop header
LB: loop body
LE: loop exit
PB: predicated region body
PF: predicated region fallthrough
CT: control target
= control target key end

     0   :  { %12 = vsyncpa [#allocation4], 0  ;;  %s2337_s0 = inlined_call_operand.vmem [shape: s32[64,9], index: 0, kind: input, shape index: {}]   ;;  %s2338_s1 = inlined_call_operand.vmem [shape: f32[64,16], index: 1, kind: input, shape index: {}]   ;;  %s2339_s2 = inlined_call_operand.hbm [shape: f32[384,128], index: 2, kind: input, shape index: {}]   ;;  %s2340_s3 = inlined_call_operand.vmem [shape: f32[1,128], index: 3, kind: input, shape index: {}]   ;;  %s2341_s4 = inlined_call_operand.vmem [shape: f32[128,128], index: 4, kind: input, shape index: {}]   ;;  %s2342_s5 = inlined_call_operand.hbm [shape: f32[64,128], index: 5, kind: output, shape index: {0}]   ;;  %s2343_s6 = inlined_call_operand.hbm [shape: f32[64,128], index: 6, kind: output, shape index: {1}]  }
   0x1   :  { %13 = vsyncpa [#allocation5], 0 }
   0x2   :  { %15 = vsyncpa [#allocation5 + $0x1], 0 }
   0x3   :  { %16 = vsyncpa [#allocation8], 0 }
   0x4   :  { %18 = vsyncpa [#allocation8 + $0x1], 0  ;;  %s1887_s21 = smov 0   ;;  %s1889_s22 = smov 0  }
   0x5   :  { %s1891_s23 = smov 0   ;;  %s1893_s24 = smov 0  }
   0x6 LB: > { %s1908_s25 = sadd.s32 4294967295, %s1832_s24   ;;  %s1181_s26 = sadd.s32 4294967294, %s1832_s24   ;;  %s1832_s24 = sphi %s1893_s24, %s2359_s24   ;;  %s1828_s23 = sphi %s1891_s23, %s2358_s23   ;;  %s1824_s22 = sphi %s1889_s22, %s2357_s22   ;;  %s1820_s21 = sphi %s1887_s21, %s2356_s21  }
   0x7   : > { %s1912_s27 = sadd.s32 1, %s1832_s24   ;;  %s146_s28 = sadd.s32 1, %s1828_s23 }
   0x8   : > { %s143_s29 = ssub.s32 %s1832_s24, %s1912_s27  ;;  %p156_p0 = scmp.ne.s32.totalorder %s1828_s23, %s1824_s22 }
   0x9   : > { %p144_p1 = scmp.eq.s32.totalorder %s143_s29, 0  ;;  %p157_p2 = scmp.eq.s32.totalorder %s1908_s25, 1 }
   0xa   : > { %p162_p3 = scmp.ne.s32.totalorder %s1824_s22, %s1820_s21  ;;  %p163_p4 = scmp.eq.s32.totalorder %s1181_s26, 1 }
   0xb   : > { %s1923_s30 = scalar_select %p144_p1, %s1828_s23, %s146_s28  }
   0xc   : > { %p1925_p5 = por %p157_p2, %p156_p0  ;;  %p1929_p6 = por %p163_p4, %p162_p3 }
   0xd   : > { %p1182_p7 = scmp.ge.s32.totalorder %s1832_s24, 1  ;;  %p196_p8 = scmp.lt.s32.totalorder %s1832_s24, 3 }
   0xe   : > { %s2347_s7 = scalar_select %p1925_p5, 1, 0 }
   0xf   : > { %s2348_s8 = scalar_select %p1929_p6, 1, 0 }
  0x10   : > { %p2344_p9 = scmp.eq.s32.totalorder %s1908_s25, 0  ;;  %p1936_p10 = pnand %p1182_p7, %p196_p8 }
  0x11   : > { %s1834_s10 = smov [#allocation3]   ;;  %s1706_s15 = scalar_lea.hbm %s2339_s2, 6144 }
  0x12   : > { %s2349_s9 = scalar_select %p1936_p10, 1, 0 }
  0x13   : > { %s208_s11 = sshll.u32 %s1834_s10, 4  ;;  %p1602_p11 = pneg %p1936_p10  ;;  %s209_s11 = int_to_ptr.vmem [resolvable:$true] %s208_s11 }
  0x14   : > { %p1707_p13 = scmp.ne.s32.totalorder %s2339_s2, %s1706_s15  ;;  %p1713_p3 = scmp.lt.u32.totalorder %s1706_s15, %s2339_s2 }
  0x15   : > { %p1944_p12 = pnand %p2344_p9, %p1602_p11 }
  0x17   : > { %p1708_p0 = pneg %p1944_p12 }
  0x19   : > { %p1709_p1 = pnand %p1708_p0, %p1707_p13 }
  0x1b   : > { %p1710_p2 = pneg %p1709_p1 }
  0x1d   : > { %p1715_p4 = pnand %p1713_p3, %p1710_p2 }
  0x1f   : > { %1718 = shalt.err (!%p1715_p4)
}
  0x20   : > { %s1719_s20 = scalar_lea.vmem %s209_s11, 6144  ;;  %p1727_p9 = scmp.lt.s32.totalorder %s209_s11, %s209_s11 }
  0x21   : > { %p1720_p7 = scmp.ne.s32.totalorder %s209_s11, %s1719_s20  ;;  %p1728_p6 = scmp.lt.s32.totalorder %s1719_s20, %s1719_s20 }
  0x23   : > { %p1722_p8 = pnand %p1720_p7, %p1708_p0  ;;  %p1729_p5 = por %p1728_p6, %p1727_p9 }
  0x25   : > { %p1723_p11 = pneg %p1722_p8 }
  0x27   : > { %p1730_p10 = pnand %p1729_p5, %p1723_p11 }
  0x29   : > { %1733 = shalt.err (!%p1730_p10)
}
  0x2a   : > { %s1835_s26 = smov 128   ;;  %s1836_s28 = smov 8  }
  0x2b   : > { %1605 = dma.hbm_to_vmem [thread:$0]  (!%p1944_p12), %s2339_s2, 6144, %s209_s11, [#allocation4], %s1835_s26, %s1835_s26, %s1836_s28  }
  0x2c   : > { %p2351_p13 = scmp.ne.s32.totalorder %s2349_s9, 0 }
  0x2d   : > { %p2352_p1 = scmp.eq.s32.totalorder (!%p2351_p13), %s1908_s25, 0 }
  0x2e   : > { %248 = sbr.rel (%p2351_p13) target bundleno = 982 (0x3d6), region = 40 }
  0x35   : > { %1807 = dma.done.wait (%p2352_p1), [#allocation4], 6144   ;;  %p2353_p0 = pmov %p2352_p1 }
  0x36   : > { %s1189_s13 = sshll.u32 %s1908_s25, 2  ;;  %v1837_v0 = vmov 2   ;;  %v1838_v1 = vmov 0   ;;  %v1839_v4 = vmov 1   ;;  %v1840_v6 = vmov 5   ;;  %v609_v10 = vld [vmem:[#allocation3 + $0x80] sm:$0xff] }
  0x37   : > { %1809 = vsyncadd (%p2353_p0), [#allocation4], 4294961152  ;;  %1666 = vset.pattern.permute.xlu1 %v1837_v0  ;;  %1664 = vset.pattern.permute.xlu0 %v1838_v1  ;;  %p289_p5 = scmp.lt.s32.totalorder %s1189_s13, 7  ;;  %v1841_v7 = vmov 4   ;;  %v1842_v8 = vmov 6   ;;  %v1843_v9 = vmov 3  }
  0x38   : > { %v610_v11 = vld [vmem:[#allocation3 + $0x88] sm:$0xff]  ;;  %v593_v13 = vld [vmem:[#allocation3] sm:$0xff]  ;;  %v611_v17 = vld [vmem:[#allocation3 + $0x90] sm:$0xff]  ;;  %v1844_v29 = vmov 7   ;;  %v1845_v43 = vmov 8   ;;  %vm572_vm0 = vcmask 130048  }
  0x39   : > { %s2361_s13 = smov (!%p289_p5, %s1189_s13), 7  ;;  %v1466_v12 = vpack.c.bf16 %v610_v11, %v609_v10  ;;  %v594_v14 = vld [vmem:[#allocation3 + $0x8] sm:$0xff]  ;;  %v612_v18 = vld [vmem:[#allocation3 + $0x98] sm:$0xff]  ;;  %v625_v19 = vld [vmem:[#allocation3 + $0x100] sm:$0xff]  ;;  %s2230_s20 = sand.u32 1, %s1824_s22  }
  0x3a   : > { %s1190_s9 = sshll.u32 %s2361_s13, 3  ;;  %v1468_v15 = vpack.c.bf16 %v594_v14, %v593_v13  ;;  %v1470_v20 = vpack.c.bf16 %v612_v18, %v611_v17  ;;  %v626_v21 = vld [vmem:[#allocation3 + $0x108] sm:$0xff]  ;;  %v595_v22 = vld [vmem:[#allocation3 + $0x10] sm:$0xff]  ;;  %v596_v23 = vld [vmem:[#allocation3 + $0x18] sm:$0xff]  ;;  %s1187_s29 = sshll.u32 %s2230_s20, 5 }
  0x3b   : > { %s1980_s14 = scalar_lea.vmem %s2337_s0, %s1190_s9  ;;  %1467 = vmatprep.subr.bf16.mxu0 %v1466_v12  ;;  %v1498_v24 = vpack.c.bf16 %v626_v21, %v625_v19  ;;  %v1472_v25 = vpack.c.bf16 %v596_v23, %v595_v22  ;;  %v613_v26 = vld [vmem:[#allocation3 + $0xa0] sm:$0xff]  ;;  %v614_v27 = vld [vmem:[#allocation3 + $0xa8] sm:$0xff]  ;;  %v627_v28 = vld [vmem:[#allocation3 + $0x110] sm:$0xff]  ;;  %s298_s17 = scalar_lea.vmem %s2338_s1, %s1190_s9 }
  0x3c   : > { %v1983_v2 = vld [vmem:[%s1980_s14] sm:$0xff]  ;;  %v1988_v3 = vld [vmem:[%s1980_s14 + $0x8] sm:$0xff]  ;;  %v1995_v5 = vld [vmem:[%s1980_s14 + $0x10] sm:$0xff]  ;;  %1469 = vmatpush3.bf16.msra.mxu0 %v1468_v15  ;;  %v1474_v30 = vpack.c.bf16 %v614_v27, %v613_v26  ;;  %s2238_s10 = scalar_lea.vmem [#allocation6], %s1187_s29  ;;  %s1238_s9 = sshll.u32 %s1908_s25, 9 }
  0x3d   : > { %365 = vperm.xlu1 %1666, %v1983_v2   ;;  %309 = vperm.xlu0 %1664, %v1983_v2   ;;  %v2016_v16 = vld [vmem:[%s1980_s14 + $0x18] sm:$0xff]  ;;  %v597_v32 = vld [vmem:[#allocation3 + $0x20] sm:$0xff]  ;;  %v598_v33 = vld [vmem:[#allocation3 + $0x28] sm:$0xff]  ;;  %s1047_s13 = sshll.u32 %s2238_s10, 4  ;;  %s2253_s14 = scalar_lea.hbm %s2342_s5, %s1238_s9  ;;  %s2245_s13 = int_to_ptr.vmem [resolvable:$true] %s1047_s13 }
  0x3e   : > { %1471 = vmatprep.subr.bf16.mxu0 %v1470_v20  ;;  %1499 = vmatprep.subr.bf16.mxu1 %v1498_v24  ;;  %v628_v31 = vld [vmem:[#allocation3 + $0x118] sm:$0xff]  ;;  %v1476_v35 = vpack.c.bf16 %v598_v33, %v597_v32  ;;  %v615_v36 = vld [vmem:[#allocation3 + $0xb0] sm:$0xff]  ;;  %v629_v38 = vld [vmem:[#allocation3 + $0x120] sm:$0xff]  ;;  %s1029_s15 = scalar_lea.sflag [#allocation5], %s2230_s20  ;;  %s1734_s16 = scalar_lea.vmem %s2245_s13, 512 }
  0x3f   : > { %1501 = vmatpush3.bf16.msra.mxu1 %v1498_v24  ;;  %v1502_v34 = vpack.c.bf16 %v628_v31, %v627_v28  ;;  %v616_v37 = vld [vmem:[#allocation3 + $0xb8] sm:$0xff]  ;;  %v630_v40 = vld [vmem:[#allocation3 + $0x128] sm:$0xff]  ;;  %v599_v41 = vld [vmem:[#allocation3 + $0x30] sm:$0xff]  ;;  %p1735_p6 = scmp.ne.s32.totalorder %s2245_s13, %s1734_s16  ;;  %p2354_p9 = scmp.ne.s32.totalorder %s2347_s7, 0 }
  0x40   : > { %1473 = vmatpush3.bf16.msra.mxu0 %v1472_v25  ;;  %v1478_v39 = vpack.c.bf16 %v616_v37, %v615_v36  ;;  %v600_v42 = vld [vmem:[#allocation3 + $0x38] sm:$0xff]  ;;  %v1506_v44 = vpack.c.bf16 %v630_v40, %v629_v38  ;;  %v617_v46 = vld [vmem:[#allocation3 + $0xc0] sm:$0xff]  ;;  %v618_v47 = vld [vmem:[#allocation3 + $0xc8] sm:$0xff] }
  0x41   : > { %1667 = vset.pattern.permute.xlu1 %v1838_v1  ;;  %1665 = vset.pattern.permute.xlu0 %v1839_v4  ;;  %v1480_v45 = vpack.c.bf16 %v600_v42, %v599_v41  ;;  %v631_v48 = vld [vmem:[#allocation3 + $0x130] sm:$0xff]  ;;  %v1482_v49 = vpack.c.bf16 %v618_v47, %v617_v46  ;;  %v632_v50 = vld [vmem:[#allocation3 + $0x138] sm:$0xff]  ;;  %v601_v51 = vld [vmem:[#allocation3 + $0x40] sm:$0xff]  ;;  %v306_v47 = vlaneseq  ;;  %p1736_p10 = pnand %p1735_p6, %p2354_p9 }
  0x42   : > { %312 = vperm.xlu1 %1667, %v1988_v3   ;;  %337 = vperm.xlu0 %1665, %v1983_v2   ;;  %v602_v52 = vld [vmem:[#allocation3 + $0x48] sm:$0xff]  ;;  %v1510_v53 = vpack.c.bf16 %v632_v50, %v631_v48  ;;  %v619_v55 = vld [vmem:[#allocation3 + $0xd0] sm:$0xff]  ;;  %v620_v56 = vld [vmem:[#allocation3 + $0xd8] sm:$0xff] }
  0x43   : > { %1475 = vmatprep.subr.bf16.mxu0 %v1474_v30  ;;  %1503 = vmatprep.subr.bf16.mxu1 %v1502_v34  ;;  %v1484_v54 = vpack.c.bf16 %v602_v52, %v601_v51  ;;  %v633_v57 = vld [vmem:[#allocation3 + $0x140] sm:$0xff]  ;;  %v1486_v58 = vpack.c.bf16 %v620_v56, %v619_v55  ;;  %v634_v59 = vld [vmem:[#allocation3 + $0x148] sm:$0xff]  ;;  %v603_v60 = vld [vmem:[#allocation3 + $0x50] sm:$0xff]  ;;  %p1737_p12 = pneg %p1736_p10 }
  0x44   : > { %1477 = vmatpush3.bf16.msra.mxu0 %v1476_v35  ;;  %1505 = vmatpush3.bf16.msra.mxu1 %v1502_v34  ;;  %v604_v61 = vld [vmem:[#allocation3 + $0x58] sm:$0xff]  ;;  %v1514_v62 = vpack.c.bf16 %v634_v59, %v633_v57  ;;  %v605_v12 = vld [vmem:[#allocation3 + $0x60] sm:$0xff]  ;;  %v606_v13 = vld [vmem:[#allocation3 + $0x68] sm:$0xff] }
  0x45   : > { %1479 = vmatprep.subr.bf16.mxu0 %v1478_v39  ;;  %1507 = vmatprep.subr.bf16.mxu1 %v1506_v44  ;;  %v1488_v63 = vpack.c.bf16 %v604_v61, %v603_v60  ;;  %v636_v11 = vld [vmem:[#allocation3 + $0x158] sm:$0xff]  ;;  %v1492_v15 = vpack.c.bf16 %v606_v13, %v605_v12  ;;  %v623_v17 = vld [vmem:[#allocation3 + $0xf0] sm:$0xff]  ;;  %v637_v19 = vld [vmem:[#allocation3 + $0x160] sm:$0xff] }
  0x46   : > { %1668 = vset.pattern.permute.xlu1 %v1839_v4  ;;  %1671 = vset.pattern.permute.xlu0 %v1838_v1  ;;  %v624_v18 = vld [vmem:[#allocation3 + $0xf8] sm:$0xff]  ;;  %v638_v21 = vld [vmem:[#allocation3 + $0x168] sm:$0xff]  ;;  %v607_v22 = vld [vmem:[#allocation3 + $0x70] sm:$0xff] }
  0x47   : > { %340 = vperm.xlu1 %1668, %v1988_v3   ;;  %315 = vperm.xlu0 %1671, %v1995_v5   ;;  %v1494_v20 = vpack.c.bf16 %v624_v18, %v623_v17  ;;  %v608_v23 = vld [vmem:[#allocation3 + $0x78] sm:$0xff]  ;;  %v1522_v24 = vpack.c.bf16 %v638_v21, %v637_v19  ;;  %v639_v26 = vld [vmem:[#allocation3 + $0x170] sm:$0xff]  ;;  %v568_v30 = vld [vmem:[%s298_s17] sm:$0xff] }
  0x48   : > { %1481 = vmatpush3.bf16.msra.mxu0 %v1480_v45  ;;  %1509 = vmatpush3.bf16.msra.mxu1 %v1506_v44  ;;  %v1496_v25 = vpack.c.bf16 %v608_v23, %v607_v22  ;;  %v640_v27 = vld [vmem:[#allocation3 + $0x178] sm:$0xff]  ;;  %v826_v31 = vld [vmem:[%s2341_s4 + $0x20] sm:$0xff]  ;;  %v827_v32 = vld [vmem:[%s2341_s4 + $0x28] sm:$0xff] }
  0x49   : > { %1483 = vmatprep.subr.bf16.mxu0 %v1482_v49  ;;  %1511 = vmatprep.subr.bf16.mxu1 %v1510_v53  ;;  %v1526_v28 = vpack.c.bf16 %v640_v27, %v639_v26  ;;  %v2094_v33 = vpack.c.bf16 %v827_v32, %v826_v31  ;;  %v2105_v49 = vand.u32 127, %v306_v47 }
  0x4a   : > { %1384 = vmatprep.mubr.msk.f32.mxu1 %vm572_vm0, %v568_v30 }
  0x4b   : > { %1669 = vset.pattern.permute.xlu1 %v1837_v0  ;;  %1674 = vset.pattern.permute.xlu0 %v1840_v6 }
  0x4c   : > { %368 = vperm.xlu1 %1669, %v1988_v3   ;;  %449 = vperm.xlu0 %1674, %v1983_v2  }
  0x4d   : > { %1485 = vmatpush3.bf16.msra.mxu0 %v1484_v54  ;;  %1513 = vmatpush3.bf16.msra.mxu1 %v1510_v53  ;;  %v1846_v53 = vmov 0.0  }
  0x4e   : > { %1487 = vmatprep.subr.bf16.mxu0 %v1486_v58  ;;  %1515 = vmatprep.subr.bf16.mxu1 %v1514_v62 }
  0x50   : > { %1670 = vset.pattern.permute.xlu1 %v1841_v7  ;;  %1677 = vset.pattern.permute.xlu0 %v1842_v8 }
  0x51   : > { %421 = vperm.xlu1 %1670, %v1983_v2   ;;  %477 = vperm.xlu0 %1677, %v1983_v2  }
  0x52   : > { %1489 = vmatpush3.bf16.msra.mxu0 %v1488_v63  ;;  %1517 = vmatpush3.bf16.msra.mxu1 %v1514_v62  ;;  %v1847_v62 = vmov 1.0  }
  0x55   : > { %1672 = vset.pattern.permute.xlu1 %v1839_v4  ;;  %1678 = vset.pattern.permute.xlu0 %v1843_v9 }
  0x56   : > { %343 = vperm.xlu1 %1672, %v1995_v5   ;;  %393 = vperm.xlu0 %1678, %v1983_v2  }
  0x5a   : > { %1673 = vset.pattern.permute.xlu1 %v1843_v9  ;;  %399 = vperm.xlu0 %1678, %v1995_v5  }
  0x5b   : > { %396 = vperm.xlu1 %1673, %v1988_v3  }
  0x5e   : > { %1683 = vset.pattern.permute.xlu0 %v1837_v0 }
  0x5f   : > { %1675 = vset.pattern.permute.xlu1 %v1837_v0  ;;  %374 = vperm.xlu0 %1683, %v2016_v16   ;;  %v621_v0 = vld [vmem:[#allocation3 + $0xe0] sm:$0xff] }
  0x60   : > { %371 = vperm.xlu1 %1675, %v1995_v5  }
  0x63   : > { %1688 = vset.pattern.permute.xlu0 %v1844_v29 }
  0x64   : > { %1676 = vset.pattern.permute.xlu1 %v1841_v7  ;;  %508 = vperm.xlu0 %1688, %v1988_v3  }
  0x65   : > { %424 = vperm.xlu1 %1676, %v1988_v3  }
  0x68   : > { %1689 = vset.pattern.permute.xlu0 %v1845_v43 }
  0x69   : > { %1679 = vset.pattern.permute.xlu1 %v1838_v1  ;;  %537 = vperm.xlu0 %1689, %v1983_v2   ;;  %v622_v1 = vld [vmem:[#allocation3 + $0xe8] sm:$0xff] }
  0x6a   : > { %318 = vperm.xlu1 %1679, %v2016_v16   ;;  %v1490_v10 = vpack.c.bf16 %v622_v1, %v621_v0 }
  0x6c   : > { %1491 = vmatprep.subr.bf16.mxu0 %v1490_v10 }
  0x6d   : > { %540 = vperm.xlu0 %1689, %v1988_v3   ;;  %1493 = vmatpush3.bf16.msra.mxu0 %v1492_v15 }
  0x6e   : > { %1680 = vset.pattern.permute.xlu1 %v1839_v4  ;;  %v635_v4 = vld [vmem:[#allocation3 + $0x150] sm:$0xff]  ;;  %1495 = vmatprep.subr.bf16.mxu0 %v1494_v20 }
  0x6f   : > { %346 = vperm.xlu1 %1680, %v2016_v16   ;;  %v1518_v14 = vpack.c.bf16 %v636_v11, %v635_v4 }
  0x71   : > { %1694 = vset.pattern.permute.xlu0 %v1842_v8  ;;  %1519 = vmatprep.subr.bf16.mxu1 %v1518_v14 }
  0x72   : > { %486 = vperm.xlu0 %1694, %v2016_v16   ;;  %1521 = vmatpush3.bf16.msra.mxu1 %v1518_v14 }
  0x73   : > { %1681 = vset.pattern.permute.xlu1 %v1840_v6  ;;  %1523 = vmatprep.subr.bf16.mxu1 %v1522_v24 }
  0x74   : > { %452 = vperm.xlu1 %1681, %v1988_v3   ;;  %1497 = vmatpush3.bf16.msra.mxu0 %v1496_v25 }
  0x76   : > { %1697 = vset.pattern.permute.xlu0 %v1845_v43  ;;  %1525 = vmatpush3.bf16.msra.mxu1 %v1522_v24 }
  0x77   : > { %546 = vperm.xlu0 %1697, %v2016_v16   ;;  %1527 = vmatprep.subr.bf16.mxu1 %v1526_v28 }
  0x78   : > { %1682 = vset.pattern.permute.xlu1 %v1844_v29 }
  0x79   : > { %505 = vperm.xlu1 %1682, %v1983_v2   ;;  %v569_v2 = vld [vmem:[%s298_s17 + $0x8] sm:$0xff] }
  0x7a   : > { %1529 = vmatpush3.bf16.msra.mxu1 %v1526_v28 }
  0x7d   : > { %1684 = vset.pattern.permute.xlu1 %v1841_v7  ;;  %1385 = vmatmul.mubr.msk.f32.vlgmr.msra.gmra.mrb[0].mxu1 %vm572_vm0, %v569_v2 }
  0x7e   : > { %427 = vperm.xlu1 %1684, %v1995_v5  }
  0x82   : > { %1685 = vset.pattern.permute.xlu1 %v1842_v8 }
  0x83   : > { %480 = vperm.xlu1 %1685, %v1988_v3   ;;  %v570_v3 = vld [vmem:[%s298_s17 + $0x10] sm:$0xff] }
  0x84   : > { %1387 = vmatprep.mubr.msk.f32.mxu1 %vm572_vm0, %v570_v3 }
  0x87   : > { %1686 = vset.pattern.permute.xlu1 %v1843_v9 }
  0x88   : > { %402 = vperm.xlu1 %1686, %v2016_v16  }
  0x8c   : > { %1687 = vset.pattern.permute.xlu1 %v1840_v6 }
  0x8d   : > { %455 = vperm.xlu1 %1687, %v1995_v5  }
  0x91   : > { %1690 = vset.pattern.permute.xlu1 %v1841_v7  ;;  %v571_v7 = vld [vmem:[%s298_s17 + $0x18] sm:$0xff]  ;;  %s1848_s17 = smov [#allocation6]  }
  0x92   : > { %430 = vperm.xlu1 %1690, %v2016_v16   ;;  %1388 = vmatmul.mubr.msk.f32.gmra.mrb[2].mxu1 %vm572_vm0, %v571_v7  ;;  %s1738_s18 = sshll.u32 %s1848_s17, 4  ;;  %s1739_s18 = int_to_ptr.vmem [resolvable:$false] %s1738_s18 }
  0x93   : > { %s1740_s19 = scalar_lea.vmem %s1739_s18, 1024  ;;  %p1741_p2 = scmp.lt.s32.totalorder %s2245_s13, %s1739_s18 }
  0x94   : > { %p1742_p3 = scmp.lt.s32.totalorder %s1740_s19, %s1734_s16 }
  0x96   : > { %1691 = vset.pattern.permute.xlu1 %v1842_v8  ;;  %v823_v8 = vld [vmem:[%s2341_s4 + $0x8] sm:$0xff]  ;;  %p1743_p4 = por %p1742_p3, %p1741_p2 }
  0x97   : > { %483 = vperm.xlu1 %1691, %v1995_v5  }
  0x98   : > { %p1744_p7 = pnand %p1743_p4, %p1737_p12 }
  0x9b   : > { %1692 = vset.pattern.permute.xlu1 %v1840_v6  ;;  %v822_v6 = vld [vmem:[%s2341_s4] sm:$0xff] }
  0x9c   : > { %458 = vperm.xlu1 %1692, %v2016_v16   ;;  %v2077_v9 = vpack.c.bf16 %v823_v8, %v822_v6 }
  0x9e   : > { %1531 = vmatprep.subr.bf16.mxu0 %v2077_v9  ;;  %1563 = vmatprep.subr.bf16.mxu1 %v2077_v9 }
  0x9f   : > { %1565 = vmatpush3.bf16.msra.mxu1 %v2077_v9 }
  0xa0   : > { %1693 = vset.pattern.permute.xlu1 %v1844_v29 }
  0xa1   : > { %511 = vperm.xlu1 %1693, %v1995_v5  }
  0xa5   : > { %1695 = vset.pattern.permute.xlu1 %v1845_v43 }
  0xa6   : > { %543 = vperm.xlu1 %1695, %v1995_v5   ;;  %v824_v5 = vld [vmem:[%s2341_s4 + $0x10] sm:$0xff] }
  0xaa   : > { %1696 = vset.pattern.permute.xlu1 %v1844_v29 }
  0xab   : > { %514 = vperm.xlu1 %1696, %v2016_v16   ;;  %v825_v16 = vld [vmem:[%s2341_s4 + $0x18] sm:$0xff] }
  0xac   : > { %v2083_v29 = vpack.c.bf16 %v825_v16, %v824_v5 }
  0xae   : > { %1567 = vmatprep.subr.bf16.mxu1 %v2083_v29 }
  0xaf   : > { %1569 = vmatpush3.bf16.msra.mxu1 %v2083_v29 }
  0xb0   : > { %1571 = vmatprep.subr.bf16.mxu1 %v2094_v33 }
  0xb3   : > { %1573 = vmatpush3.bf16.msra.mxu1 %v2094_v33 }
  0xbc   : > { %v366_v34 = vpop.permute.xlu1 %365  ;;  %v310_v35 = vpop.permute.xlu0 %309 }
  0xbd   : > { %vm320_vm1 = vcmp.eq.s32.totalorder %v310_v35, %v2105_v49  ;;  %vm376_vm3 = vcmp.eq.s32.totalorder %v366_v34, %v2105_v49 }
  0xbe   : > { %v1193_v54 = vsel %vm320_vm1, 1.0, %v1846_v53  ;;  %v1201_v60 = vsel %vm376_vm3, 1.0, %v1846_v53 }
  0xc1   : > { %v313_v36 = vpop.permute.xlu1 %312  ;;  %v338_v37 = vpop.permute.xlu0 %337 }
  0xc2   : > { %vm348_vm2 = vcmp.eq.s32.totalorder %v338_v37, %v2105_v49  ;;  %vm321_vm10 = vcmp.eq.s32.totalorder %v313_v36, %v2105_v49 }
  0xc3   : > { %v1197_v55 = vsel %vm348_vm2, 1.0, %v1846_v53  ;;  %v1194_v20 = vsel %vm321_vm10, 1.0, %v1846_v53 }
  0xc4   : > { %v360_v57 = vadd.f32 %v1197_v55, %v1193_v54 }
  0xc6   : > { %v341_v38 = vpop.permute.xlu1 %340  ;;  %v2099_v39 = vpop.permute.xlu0 %315  ;;  %v388_v63 = vadd.f32 %v1201_v60, %v360_v57 }
  0xc7   : > { %vm349_vm9 = vcmp.eq.s32.totalorder %v341_v38, %v2105_v49  ;;  %vm322_vm3 = vcmp.eq.s32.totalorder %v2099_v39, %v2105_v49 }
  0xc8   : > { %v1198_v15 = vsel %vm349_vm9, 1.0, %v1846_v53 }
  0xc9   : > { %v361_v23 = vadd.f32 %v1198_v15, %v1194_v20  ;;  %v832_v20 = vld [vmem:[%s2341_s4 + $0x50] sm:$0xff] }
  0xcb   : > { %v369_v40 = vpop.permute.xlu1 %368  ;;  %v450_v41 = vpop.permute.xlu0 %449 }
  0xcc   : > { %vm460_vm7 = vcmp.eq.s32.totalorder %v450_v41, %v2105_v49  ;;  %vm377_vm11 = vcmp.eq.s32.totalorder %v369_v40, %v2105_v49 }
  0xcd   : > { %v1213_v11 = vsel %vm460_vm7, 1.0, %v1846_v53  ;;  %v1202_v21 = vsel %vm377_vm11, 1.0, %v1846_v53 }
  0xce   : > { %v389_v26 = vadd.f32 %v1202_v21, %v361_v23  ;;  %v833_v21 = vld [vmem:[%s2341_s4 + $0x58] sm:$0xff] }
  0xcf   : > { %v1550_v23 = vpack.c.bf16 %v833_v21, %v832_v20 }
  0xd0   : > { %v422_v42 = vpop.permute.xlu1 %421  ;;  %v478_v43 = vpop.permute.xlu0 %477 }
  0xd1   : > { %vm432_vm6 = vcmp.eq.s32.totalorder %v422_v42, %v2105_v49  ;;  %vm488_vm8 = vcmp.eq.s32.totalorder %v478_v43, %v2105_v49 }
  0xd2   : > { %v1209_v4 = vsel %vm432_vm6, 1.0, %v1846_v53  ;;  %v1217_v14 = vsel %vm488_vm8, 1.0, %v1846_v53 }
  0xd5   : > { %v2101_v44 = vpop.permute.xlu1 %343  ;;  %v394_v45 = vpop.permute.xlu0 %393 }
  0xd6   : > { %vm404_vm4 = vcmp.eq.s32.totalorder %v394_v45, %v2105_v49 }
  0xd7   : > { %v1205_v61 = vsel %vm404_vm4, 1.0, %v1846_v53  ;;  %vm350_vm4 = vcmp.eq.s32.totalorder %v2101_v44, %v2105_v49 }
  0xd8   : > { %v416_v0 = vadd.f32 %v1205_v61, %v388_v63  ;;  %v1199_v35 = vsel %vm350_vm4, 1.0, %v1846_v53 }
  0xd9   : > { %v2103_v48 = vpop.permute.xlu0 %399 }
  0xda   : > { %v397_v46 = vpop.permute.xlu1 %396  ;;  %v444_v10 = vadd.f32 %v1209_v4, %v416_v0  ;;  %vm406_vm7 = vcmp.eq.s32.totalorder %v2103_v48, %v2105_v49 }
  0xdb   : > { %vm405_vm12 = vcmp.eq.s32.totalorder %v397_v46, %v2105_v49  ;;  %v1207_v40 = vsel %vm406_vm7, 1.0, %v1846_v53 }
  0xdc   : > { %v472_v13 = vadd.f32 %v1213_v11, %v444_v10  ;;  %v1206_v25 = vsel %vm405_vm12, 1.0, %v1846_v53 }
  0xdd   : > { %v417_v30 = vadd.f32 %v1206_v25, %v389_v26  ;;  %v834_v25 = vld [vmem:[%s2341_s4 + $0x60] sm:$0xff]  ;;  %v835_v26 = vld [vmem:[%s2341_s4 + $0x68] sm:$0xff] }
  0xde   : > { %v2109_v51 = vpop.permute.xlu0 %374  ;;  %v500_v19 = vadd.f32 %v1217_v14, %v472_v13 }
  0xdf   : > { %v2107_v50 = vpop.permute.xlu1 %371  ;;  %vm379_vm10 = vcmp.eq.s32.totalorder %v2109_v51, %v2105_v49 }
  0xe0   : > { %v1204_v46 = vsel %vm379_vm10, 1.0, %v1846_v53 }
  0xe3   : > { %v509_v52 = vpop.permute.xlu0 %508 }
  0xe4   : > { %v425_v56 = vpop.permute.xlu1 %424  ;;  %vm517_vm1 = vcmp.eq.s32.totalorder %v509_v52, %v2105_v49 }
  0xe5   : > { %vm433_vm14 = vcmp.eq.s32.totalorder %v425_v56, %v2105_v49  ;;  %v1222_v8 = vsel %vm517_vm1, 1.0, %v1846_v53 }
  0xe6   : > { %v1210_v28 = vsel %vm433_vm14, 1.0, %v1846_v53 }
  0xe7   : > { %v445_v3 = vadd.f32 %v1210_v28, %v417_v30  ;;  %v836_v28 = vld [vmem:[%s2341_s4 + $0x70] sm:$0xff]  ;;  %v837_v30 = vld [vmem:[%s2341_s4 + $0x78] sm:$0xff] }
  0xe8   : > { %v538_v58 = vpop.permute.xlu0 %537 }
  0xe9   : > { %v2117_v59 = vpop.permute.xlu1 %318  ;;  %vm548_vm5 = vcmp.eq.s32.totalorder %v538_v58, %v2105_v49 }
  0xea   : > { %1240 = vmatprep.mubr.msk.f32.mxu0 %vm548_vm5, %v1847_v62  ;;  %vm378_vm5 = vcmp.eq.s32.totalorder %v2107_v50, %v2105_v49  ;;  %vm323_vm8 = vcmp.eq.s32.totalorder %v2117_v59, %v2105_v49 }
  0xeb   : > { %v1196_v42 = vsel %vm323_vm8, 1.0, %v1846_v53 }
  0xec   : > { %v541_v18 = vpop.permute.xlu0 %540 }
  0xed   : > { %vm549_vm15 = vcmp.eq.s32.totalorder %v541_v18, %v2105_v49  ;;  %v829_v18 = vld [vmem:[%s2341_s4 + $0x38] sm:$0xff] }
  0xee   : > { %v2124_v1 = vpop.permute.xlu1 %346 }
  0xef   : > { %vm351_vm6 = vcmp.eq.s32.totalorder %v2124_v1, %v2105_v49 }
  0xf0   : > { %v1200_v39 = vsel %vm351_vm6, 1.0, %v1846_v53 }
  0xf1   : > { %v363_v43 = vadd.f32 %v1200_v39, %v1196_v42  ;;  %v487_v48 = vpop.permute.xlu0 %486 }
  0xf2   : > { %vm491_vm1 = vcmp.eq.s32.totalorder %v487_v48, %v2105_v49 }
  0xf3   : > { %v453_v12 = vpop.permute.xlu1 %452  ;;  %v391_v54 = vadd.f32 %v1204_v46, %v363_v43  ;;  %v1220_v11 = vsel %vm491_vm1, 1.0, %v1846_v53 }
  0xf4   : > { %vm461_vm0 = vcmp.eq.s32.totalorder %v453_v12, %v2105_v49 }
  0xf5   : > { %v1214_v2 = vsel %vm461_vm0, 1.0, %v1846_v53 }
  0xf6   : > { %v473_v6 = vadd.f32 %v1214_v2, %v445_v3  ;;  %v547_v60 = vpop.permute.xlu0 %546  ;;  %v1558_v2 = vpack.c.bf16 %v837_v30, %v836_v28 }
  0xf8   : > { %v506_v17 = vpop.permute.xlu1 %505 }
  0xf9   : > { %vm516_vm13 = vcmp.eq.s32.totalorder %v506_v17, %v2105_v49  ;;  %v828_v17 = vld [vmem:[%s2341_s4 + $0x30] sm:$0xff] }
  0xfa   : > { %v1221_v22 = vsel %vm516_vm13, 1.0, %v1846_v53 }
  0xfb   : > { %v528_v24 = vadd.f32 %v1221_v22, %v500_v19  ;;  %v1542_v19 = vpack.c.bf16 %v829_v18, %v828_v17 }
  0xfd   : > { %v428_v27 = vpop.permute.xlu1 %427  ;;  %713 = vmatmul.mubr.f32.vlgmr.msra.gmra.mrb[0].mxu0 %v528_v24  ;;  %1575 = vmatprep.subr.bf16.mxu1 %v1542_v19 }
  0xfe   : > { %1241 = vmatprep.mubr.msk.f32.mxu0 %vm549_vm15, %v1847_v62  ;;  %1533 = vmatpush3.bf16.msra.mxu0 %v2077_v9  ;;  %vm434_vm9 = vcmp.eq.s32.totalorder %v428_v27, %v2105_v49  ;;  %v1554_v27 = vpack.c.bf16 %v835_v26, %v834_v25 }
  0xff   : > { %1535 = vmatprep.subr.bf16.mxu0 %v2083_v29  ;;  %v1211_v44 = vsel %vm434_vm9, 1.0, %v1846_v53  ;;  %1577 = vmatpush3.bf16.msra.mxu1 %v1542_v19 }
 0x102   : > { %v481_v7 = vpop.permute.xlu1 %480  ;;  %1537 = vmatpush3.bf16.msra.mxu0 %v2083_v29  ;;  %v1195_v29 = vsel %vm322_vm3, 1.0, %v1846_v53  ;;  %vm551_vm3 = vcmp.eq.s32.totalorder %v547_v60, %v2105_v49 }
 0x103   : > { %vm489_vm2 = vcmp.eq.s32.totalorder %v481_v7, %v2105_v49  ;;  %1539 = vmatprep.subr.bf16.mxu0 %v2094_v33  ;;  %v362_v37 = vadd.f32 %v1199_v35, %v1195_v29 }
 0x104   : > { %v1218_v5 = vsel %vm489_vm2, 1.0, %v1846_v53 }
 0x105   : > { %v501_v9 = vadd.f32 %v1218_v5, %v473_v6  ;;  %v1229_v5 = vld [vmem:[%s2340_s3] ss:$0 sm:$0xff] }
 0x106   : > { %1541 = vmatpush3.bf16.msra.mxu0 %v2094_v33  ;;  %v1203_v33 = vsel %vm378_vm5, 1.0, %v1846_v53 }
 0x107   : > { %v403_v16 = vpop.permute.xlu1 %402  ;;  %v529_v31 = vadd.f32 %v1222_v8, %v501_v9  ;;  %v390_v38 = vadd.f32 %v1203_v33, %v362_v37  ;;  %1543 = vmatprep.subr.bf16.mxu0 %v1542_v19 }
 0x108   : > { %vm407_vm12 = vcmp.eq.s32.totalorder %v403_v16, %v2105_v49 }
 0x109   : > { %718 = vmatmul.mubr.f32.gmra.mrb[2].mxu0 %v529_v31  ;;  %v418_v45 = vadd.f32 %v1207_v40, %v390_v38  ;;  %v1208_v51 = vsel %vm407_vm12, 1.0, %v1846_v53 }
 0x10a   : > { %v419_v58 = vadd.f32 %v1208_v51, %v391_v54  ;;  %1545 = vmatpush3.bf16.msra.mxu0 %v1542_v19 }
 0x10b   : > { %v446_v50 = vadd.f32 %v1211_v44, %v418_v45 }
 0x10c   : > { %v456_v32 = vpop.permute.xlu1 %455 }
 0x10d   : > { %vm462_vm11 = vcmp.eq.s32.totalorder %v456_v32, %v2105_v49 }
 0x10e   : > { %v1215_v47 = vsel %vm462_vm11, 1.0, %v1846_v53 }
 0x10f   : > { %v474_v56 = vadd.f32 %v1215_v47, %v446_v50 }
 0x111   : > { %v431_v34 = vpop.permute.xlu1 %430 }
 0x112   : > { %vm435_vm14 = vcmp.eq.s32.totalorder %v431_v34, %v2105_v49 }
 0x113   : > { %v1212_v57 = vsel %vm435_vm14, 1.0, %v1846_v53 }
 0x114   : > { %v447_v0 = vadd.f32 %v1212_v57, %v419_v58 }
 0x116   : > { %v484_v36 = vpop.permute.xlu1 %483 }
 0x117   : > { %vm490_vm13 = vcmp.eq.s32.totalorder %v484_v36, %v2105_v49 }
 0x118   : > { %v1219_v55 = vsel %vm490_vm13, 1.0, %v1846_v53 }
 0x119   : > { %v502_v61 = vadd.f32 %v1219_v55, %v474_v56 }
 0x11b   : > { %v459_v41 = vpop.permute.xlu1 %458 }
 0x11c   : > { %vm463_vm15 = vcmp.eq.s32.totalorder %v459_v41, %v2105_v49 }
 0x11d   : > { %v1216_v63 = vsel %vm463_vm15, 1.0, %v1846_v53 }
 0x11e   : > { %v475_v10 = vadd.f32 %v1216_v63, %v447_v0 }
 0x120   : > { %v512_v52 = vpop.permute.xlu1 %511  ;;  %v503_v13 = vadd.f32 %v1220_v11, %v475_v10 }
 0x121   : > { %vm518_vm0 = vcmp.eq.s32.totalorder %v512_v52, %v2105_v49 }
 0x122   : > { %v1223_v59 = vsel %vm518_vm0, 1.0, %v1846_v53 }
 0x123   : > { %v530_v4 = vadd.f32 %v1223_v59, %v502_v61 }
 0x125   : > { %v544_v1 = vpop.permute.xlu1 %543 }
 0x126   : > { %vm550_vm2 = vcmp.eq.s32.totalorder %v544_v1, %v2105_v49 }
 0x127   : > { %1242 = vmatprep.mubr.msk.f32.mxu0 %vm550_vm2, %v1847_v62 }
 0x128   : > { %723 = vmatmul.mubr.f32.gmra.mrb[4].mxu0 %v530_v4 }
 0x129   : > { %1243 = vmatprep.mubr.msk.f32.mxu0 %vm551_vm3, %v1847_v62 }
 0x12a   : > { %v515_v12 = vpop.permute.xlu1 %514 }
 0x12b   : > { %vm519_vm4 = vcmp.eq.s32.totalorder %v515_v12, %v2105_v49  ;;  %v830_v49 = vld [vmem:[%s2341_s4 + $0x40] sm:$0xff] }
 0x12c   : > { %v1224_v14 = vsel %vm519_vm4, 1.0, %v1846_v53  ;;  %v831_v53 = vld [vmem:[%s2341_s4 + $0x48] sm:$0xff] }
 0x12d   : > { %v531_v15 = vadd.f32 %v1224_v14, %v503_v13  ;;  %v1546_v62 = vpack.c.bf16 %v831_v53, %v830_v49 }
 0x12f   : > { %728 = vmatmul.mubr.f32.gmra.mrb[6].mxu0 %v531_v15  ;;  %1547 = vmatprep.subr.bf16.mxu0 %v1546_v62 }
 0x130   : > { %1579 = vmatprep.subr.bf16.mxu1 %v1546_v62  ;;  %1549 = vmatpush3.bf16.msra.mxu0 %v1546_v62 }
 0x131   : > { %1581 = vmatpush3.bf16.msra.mxu1 %v1546_v62  ;;  %1551 = vmatprep.subr.bf16.mxu0 %v1550_v23 }
 0x132   : > { %1583 = vmatprep.subr.bf16.mxu1 %v1550_v23 }
 0x134   : > { %1553 = vmatpush3.bf16.msra.mxu0 %v1550_v23 }
 0x135   : > { %1585 = vmatpush3.bf16.msra.mxu1 %v1550_v23  ;;  %1555 = vmatprep.subr.bf16.mxu0 %v1554_v27 }
 0x136   : > { %1587 = vmatprep.subr.bf16.mxu1 %v1554_v27 }
 0x138   : > { %1557 = vmatpush3.bf16.msra.mxu0 %v1554_v27 }
 0x139   : > { %1589 = vmatpush3.bf16.msra.mxu1 %v1554_v27  ;;  %1559 = vmatprep.subr.bf16.mxu0 %v1558_v2 }
 0x13a   : > { %1591 = vmatprep.subr.bf16.mxu1 %v1558_v2 }
 0x13c   : > { %1561 = vmatpush3.bf16.msra.mxu0 %v1558_v2 }
 0x13d   : > { %1593 = vmatpush3.bf16.msra.mxu1 %v1558_v2 }
 0x150   : > { %v1386_v22 = vpop.f32.mrb[0].mxu1 }
 0x151   : > { %v799_v24 = vpop.f32.mrb[1].mxu1 }
 0x165   : > { %v1389_v3 = vpop.f32.mrb[2].mxu1 }
 0x166   : > { %v809_v7 = vpop.f32.mrb[3].mxu1 }
 0x1d0   : > { %v1280_v6 = vpop.f32.mrb[0].mxu0 }
 0x1d1   : > { %v1281_v8 = vpop.f32.mrb[1].mxu0 }
 0x1d2   : > { %v1282_v9 = vadd.f32 %v1281_v8, %v1280_v6 }
 0x1d4   : > { %v715_v16 = vadd.f32 %v1282_v9, %v1229_v5 }
 0x1d6   : > { %v800_v31 = vadd.f32 %v799_v24, %v715_v16 }
 0x1d8   : > { %818 = vst [vmem:[%s2238_s10] sm:$0xff] %v800_v31  ;;  %1422 = vmatprep.mubr.f32.mxu0 %v800_v31 }
 0x1dc   : > { %v1283_v32 = vpop.f32.mrb[2].mxu0 }
 0x1dd   : > { %v1284_v34 = vpop.f32.mrb[3].mxu0 }
 0x1de   : > { %v1285_v29 = vadd.f32 %v1284_v34, %v1283_v32 }
 0x1e0   : > { %v720_v35 = vadd.f32 %v1285_v29, %v1229_v5 }
 0x1e2   : > { %v805_v36 = vadd.f32 %v1386_v22, %v720_v35 }
 0x1e4   : > { %819 = vst [vmem:[%s2238_s10 + $0x8] sm:$0xff] %v805_v36  ;;  %1423 = vmatmul.mubr.f32.vlgmr.msra.gmra.mrb[8].mxu0 %v805_v36 }
 0x1fb   : > { %v1286_v33 = vpop.f32.mrb[4].mxu0 }
 0x1fc   : > { %v1287_v37 = vpop.f32.mrb[5].mxu0 }
 0x1fd   : > { %v1288_v38 = vadd.f32 %v1287_v37, %v1286_v33 }
 0x1ff   : > { %v725_v39 = vadd.f32 %v1288_v38, %v1229_v5 }
 0x201   : > { %v810_v40 = vadd.f32 %v809_v7, %v725_v39 }
 0x202   : > { %v1289_v41 = vpop.f32.mrb[6].mxu0 }
 0x203   : > { %820 = vst [vmem:[%s2238_s10 + $0x10] sm:$0xff] %v810_v40  ;;  %v1290_v42 = vpop.f32.mrb[7].mxu0  ;;  %1425 = vmatprep.mubr.f32.mxu0 %v810_v40 }
 0x204   : > { %v1291_v43 = vadd.f32 %v1290_v42, %v1289_v41 }
 0x206   : > { %v730_v44 = vadd.f32 %v1291_v43, %v1229_v5 }
 0x208   : > { %v815_v45 = vadd.f32 %v1389_v3, %v730_v44 }
 0x20a   : > { %821 = vst [vmem:[%s2238_s10 + $0x18] sm:$0xff] %v815_v45  ;;  %1426 = vmatmul.mubr.f32.gmra.mrb[10].mxu0 %v815_v45 }
 0x2b7   : > { %v1424_v46 = vpop.f32.mrb[8].mxu0 }
 0x2b8   : > { %v924_v47 = vsub.f32 %v805_v36, %v1424_v46  ;;  %v904_v48 = vpop.f32.mrb[9].mxu0 }
 0x2b9   : > { %v923_v50 = vsub.f32 %v800_v31, %v904_v48 }
 0x2ba   : > { %v928_v52 = vmul.f32 %v924_v47, %v924_v47 }
 0x2bb   : > { %v927_v51 = vmul.f32 %v923_v50, %v923_v50 }
 0x2bd   : > { %1460 = vmatprep.mubr.f32.mxu1 %v927_v51 }
 0x2be   : > { %1461 = vmatmul.mubr.f32.vlgmr.msra.gmra.mrb[4].mxu1 %v928_v52 }
 0x2dd   : > { %v1427_v54 = vpop.f32.mrb[10].mxu0 }
 0x2de   : > { %v926_v55 = vsub.f32 %v815_v45, %v1427_v54  ;;  %v914_v56 = vpop.f32.mrb[11].mxu0 }
 0x2df   : > { %v925_v57 = vsub.f32 %v810_v40, %v914_v56 }
 0x2e0   : > { %v930_v59 = vmul.f32 %v926_v55, %v926_v55 }
 0x2e1   : > { %v929_v58 = vmul.f32 %v925_v57, %v925_v57 }
 0x2e3   : > { %1463 = vmatprep.mubr.f32.mxu1 %v929_v58 }
 0x2e4   : > { %1464 = vmatmul.mubr.f32.gmra.mrb[6].mxu1 %v930_v59 }
 0x2e5   : > { %1747 = shalt.err (!%p1744_p7)
}
 0x2e6   : > { %s1748_s26 = scalar_lea.hbm %s2253_s14, 512  ;;  %s1752_s11 = scalar_lea.hbm %s2342_s5, 1024 }
 0x2e7   : > { %p1749_p8 = scmp.ne.s32.totalorder %s2253_s14, %s1748_s26  ;;  %p1753_p1 = scmp.lt.u32.totalorder %s2253_s14, %s2342_s5 }
 0x2e8   : > { %p1754_p0 = scmp.lt.u32.totalorder %s1752_s11, %s1748_s26  ;;  %p1756_p6 = scmp.lt.u32.totalorder %s1748_s26, %s2253_s14 }
 0x2e9   : > { %p1750_p11 = pnand %p1749_p8, %p2354_p9 }
 0x2ea   : > { %p1755_p5 = por %p1754_p0, %p1753_p1 }
 0x2eb   : > { %p1751_p13 = pneg %p1750_p11 }
 0x2ec   : > { %p1757_p10 = por %p1756_p6, %p1755_p5 }
 0x2ee   : > { %p1758_p12 = pnand %p1757_p10, %p1751_p13 }
 0x2f0   : > { %1761 = shalt.err (!%p1758_p12)
}
 0x2f1   : > { %s1849_s16 = smov 128   ;;  %s1850_s18 = smov 8  }
 0x2f2   : > { %1598 = dma.vmem_to_hbm [thread:$0]  (%p2354_p9), %s2245_s13, 512, %s2253_s14, %s1029_s15, %s1849_s16, %s1849_s16, %s1850_s18  }
 0x2f3   : > { %s287_s19 = scalar_lea.vmem [#allocation7], %s1187_s29  ;;  %s2291_s15 = scalar_lea.hbm %s2343_s6, %s1238_s9 }
 0x2f4   : > { %s1063_s13 = sshll.u32 %s287_s19, 4  ;;  %s1034_s26 = scalar_lea.sflag [#allocation8], %s2230_s20  ;;  %s2284_s13 = int_to_ptr.vmem [resolvable:$true] %s1063_s13 }
 0x2f5   : > { %s1762_s28 = scalar_lea.vmem %s2284_s13, 512  ;;  %s1851_s10 = smov [#allocation7]  }
 0x2f6   : > { %p1763_p2 = scmp.ne.s32.totalorder %s2284_s13, %s1762_s28  ;;  %s1766_s11 = sshll.u32 %s1851_s10, 4  ;;  %s1767_s11 = int_to_ptr.vmem [resolvable:$false] %s1766_s11 }
 0x2f7   : > { %s1768_s12 = scalar_lea.vmem %s1767_s11, 1024  ;;  %p1769_p7 = scmp.lt.s32.totalorder %s2284_s13, %s1767_s11 }
 0x2f8   : > { %p1764_p3 = pnand %p1763_p2, %p2354_p9  ;;  %p1770_p8 = scmp.lt.s32.totalorder %s1768_s12, %s1762_s28 }
 0x2fa   : > { %p1765_p4 = pneg %p1764_p3  ;;  %p1771_p11 = por %p1770_p8, %p1769_p7 }
 0x2fc   : > { %p1772_p13 = pnand %p1771_p11, %p1765_p4 }
 0x391   : > { %v1462_v60 = vpop.f32.mrb[4].mxu1 }
 0x392   : > { %v1003_v61 = vadd.f32 1e-05, %v1462_v60  ;;  %v997_v63 = vpop.f32.mrb[5].mxu1 }
 0x393   : > { %v998_v0 = vadd.f32 1e-05, %v997_v63 }
 0x394   : > { %1698 = vrsqrt.f32 %v1003_v61 }
 0x395   : > { %1700 = vrsqrt.f32 %v998_v0 }
 0x39e   : > { %v1699_v1 = vpop.eup %1698 }
 0x39f   : > { %v1701_v4 = vpop.eup %1700  ;;  %v1021_v10 = vmul.f32 %v1699_v1, %v924_v47 }
 0x3a0   : > { %v1020_v11 = vmul.f32 %v1701_v4, %v923_v50 }
 0x3a1   : > { %1025 = vst [vmem:[%s287_s19 + $0x8] sm:$0xff] %v1021_v10 }
 0x3a2   : > { %1024 = vst [vmem:[%s287_s19] sm:$0xff] %v1020_v11 }
 0x3b7   : > { %v1465_v12 = vpop.f32.mrb[6].mxu1 }
 0x3b8   : > { %v1013_v13 = vadd.f32 1e-05, %v1465_v12  ;;  %v1007_v14 = vpop.f32.mrb[7].mxu1 }
 0x3b9   : > { %v1008_v15 = vadd.f32 1e-05, %v1007_v14 }
 0x3ba   : > { %1702 = vrsqrt.f32 %v1013_v13 }
 0x3bb   : > { %1704 = vrsqrt.f32 %v1008_v15 }
 0x3c4   : > { %v1703_v17 = vpop.eup %1702 }
 0x3c5   : > { %v1705_v18 = vpop.eup %1704  ;;  %v1023_v19 = vmul.f32 %v1703_v17, %v926_v55 }
 0x3c6   : > { %v1022_v49 = vmul.f32 %v1705_v18, %v925_v57 }
 0x3c7   : > { %1027 = vst [vmem:[%s287_s19 + $0x18] sm:$0xff] %v1023_v19 }
 0x3c8   : > { %1026 = vst [vmem:[%s287_s19 + $0x10] sm:$0xff] %v1022_v49 }
 0x3c9   : > { %1775 = shalt.err (!%p1772_p13)
}
 0x3ca   : > { %s1776_s25 = scalar_lea.hbm %s2291_s15, 512  ;;  %s1780_s19 = scalar_lea.hbm %s2343_s6, 1024 }
 0x3cb   : > { %p1777_p1 = scmp.ne.s32.totalorder %s2291_s15, %s1776_s25  ;;  %p1781_p6 = scmp.lt.u32.totalorder %s2291_s15, %s2343_s6 }
 0x3cc   : > { %p1782_p10 = scmp.lt.u32.totalorder %s1780_s19, %s1776_s25  ;;  %p1784_p2 = scmp.lt.u32.totalorder %s1776_s25, %s2291_s15 }
 0x3cd   : > { %p1778_p0 = pnand %p1777_p1, %p2354_p9 }
 0x3ce   : > { %p1783_p12 = por %p1782_p10, %p1781_p6 }
 0x3cf   : > { %p1779_p5 = pneg %p1778_p0 }
 0x3d0   : > { %p1785_p3 = por %p1784_p2, %p1783_p12 }
 0x3d2   : > { %p1786_p4 = pnand %p1785_p3, %p1779_p5 }
 0x3d4   : > { %1789 = shalt.err (!%p1786_p4)
}
 0x3d5   : > { %1599 = dma.vmem_to_hbm [thread:$0]  (%p2354_p9), %s2284_s13, 512, %s2291_s15, %s1034_s26, %s1849_s16, %s1849_s16, %s1850_s18  }
 0x3d6 PF: > { %p1615_p7 = scmp.ge.s32.totalorder %s1832_s24, 2  ;;  %s1078_s28 = sand.u32 1, %s1820_s21  }
 0x3d7   : > { %p2355_p8 = scmp.ne.s32.totalorder %s2348_s8, 0  ;;  %s1079_s10 = scalar_lea.sflag [#allocation5], %s1078_s28 }
 0x3d9   : > { %p1607_p11 = pnand %p1615_p7, %p2355_p8 }
 0x3db   : > { %1811 = dma.done.wait (!%p1607_p11), %s1079_s10, 512  }
 0x3dc   : > { %1813 = vsyncadd (!%p1607_p11), %s1079_s10, 4294966784  ;;  %s1088_s7 = scalar_lea.sflag [#allocation8], %s1078_s28 }
 0x3dd   : > { %1815 = dma.done.wait (!%p1607_p11), %s1088_s7, 512  }
 0x3de   : > { %1817 = vsyncadd (!%p1607_p11), %s1088_s7, 4294966784  ;;  %p21_p9 = scmp.ge.s32.totalorder %s1912_s27, 4   ;;  %s2356_s21 = smov %s1824_s22 }
 0x3df   : > { %s2357_s22 = smov %s1828_s23  ;;  %s2358_s23 = smov %s1923_s30 }
 0x3e0   : > { %s2359_s24 = smov %s1912_s27  ;;  %23 = sbr.rel (!%p21_p9) target bundleno = 6 (0x6), region = 100 }
 0x3e7   :  { %1093 = vsyncpa [#allocation4], 1 }
 0x3e8   :  { %1095 = vsyncpa [#allocation4 + $0x1], 1 }
 0x3e9   :  { %1096 = vsyncpa [#allocation5], 1 }
 0x3ea   :  { %1098 = vsyncpa [#allocation5 + $0x1], 1 }
 0x3eb   :  { %1099 = vsyncpa [#allocation8], 1 }
 0x3ec   :  { %1101 = vsyncpa [#allocation8 + $0x1], 1 }

</bundles_post_ra>
